<compile_context>
chip_gen: v6e
topology: v6e:2x2x1
jax: 0.10.0
libtpu: 0.0.40
codegen_flags: <defaults>
</compile_context>

<pallas_src>
import functools

import jax
import jax.numpy as jnp
from jax.experimental import pallas as pl
from jax.experimental.pallas import tpu as pltpu


# ----------------------------------------------------------------------------
# In-kernel building blocks (operate on VMEM-resident values, never touch HBM)
# ----------------------------------------------------------------------------
def _dilated_conv_valid(a, w_flat, b, K, dilation):
    """Causal dilated conv, 'valid' rows only.

    a:      (La, Ci) activation value.
    w_flat: (K*Ci, Co) weights, tap k occupying rows [k*Ci, (k+1)*Ci).
    Returns (La - (K-1)*dilation, Co): outputs whose receptive field lies fully
    inside `a` (rows that would read the causal zero padding are not produced).
    """
    pad = (K - 1) * dilation
    Lo = a.shape[0] - pad
    if K == 1:
        slab = a
    else:
        # im2col along lanes -> one wide MXU matmul instead of K narrow ones.
        slab = jnp.concatenate(
            [a[k * dilation:k * dilation + Lo, :] for k in range(K)], axis=-1)
    return jnp.dot(slab, w_flat, preferred_element_type=jnp.float32) + b


def _temporal_block(a, w1, b1, w2, b2, wd, bd, K, dilation):
    """relu( relu(conv2(relu(conv1(a)))) + residual ), valid rows only."""
    pad = (K - 1) * dilation
    h = jnp.maximum(_dilated_conv_valid(a, w1, b1, K, dilation), 0.0)
    o = jnp.maximum(_dilated_conv_valid(h, w2, b2, K, dilation), 0.0)
    x_res = a[2 * pad:, :]                       # residual rows aligned with o
    if wd is None:
        res = x_res
    else:
        res = jnp.dot(x_res, wd, preferred_element_type=jnp.float32) + bd
    return jnp.maximum(o + res, 0.0)


def _bilat_tcn_kernel(*refs, c_blocks, nc_blocks, drop_c, drop_nc):
    """Whole BilatTCN forward for one batch element: both TCN stacks + head."""
    refs = list(refs)
    o_ref = refs.pop()                           # single output ref is last
    it = iter(refs)
    x_c_ref = next(it)
    x_nc_ref = next(it)

    def run_stack(x_ref, blocks):
        a = x_ref[0]                             # (L, Ci), VMEM resident
        for (K, dilation, has_ds) in blocks:     # static Python loop (few blocks)
            w1 = next(it)[...]
            b1 = next(it)[...]
            w2 = next(it)[...]
            b2 = next(it)[...]
            if has_ds:
                wd = next(it)[...]
                bd = next(it)[...]
            else:
                wd = bd = None
            a = _temporal_block(a, w1, b1, w2, b2, wd, bd, K, dilation)
        return a

    yc = run_stack(x_c_ref, c_blocks)            # (L_c - rf_c, Cc)
    ync = run_stack(x_nc_ref, nc_blocks)         # (L_nc - rf_nc, Cnc)

    wc = next(it)[...]
    wnc = next(it)[...]
    b_lin = next(it)[...]

    yc_v = yc[drop_c:, :]                        # drop = eff_hist - receptive_field
    ync_v = ync[drop_nc:, :]
    # TODO(synk): for large Lv store the head output transposed so the single
    #             remaining HBM store is lane-dense (Out is tiny).
    o = jnp.dot(yc_v, wc, preferred_element_type=jnp.float32)
    o = o + jnp.dot(ync_v, wnc, preferred_element_type=jnp.float32)
    o_ref[0] = (o + b_lin).astype(o_ref.dtype)


# ----------------------------------------------------------------------------
# Wrapper: one pallas_call for the whole forward pass
# ----------------------------------------------------------------------------
def _stack_args(blocks):
    """Flatten one TCN stack's params into kernel args / specs / static meta."""
    args, specs, meta = [], [], []
    rf = 0
    for i, p in enumerate(blocks):
        dilation = 2 ** i
        K, ci, co = p["w1"].shape
        w1f = p["w1"].reshape(K * ci, co)        # im2col-packed taps
        w2f = p["w2"].reshape(K * co, co)
        args += [w1f, p["b1"], w2f, p["b2"]]
        specs += [pl.BlockSpec(w1f.shape, lambda n: (0, 0)),
                  pl.BlockSpec(p["b1"].shape, lambda n: (0, 0)),
                  pl.BlockSpec(w2f.shape, lambda n: (0, 0)),
                  pl.BlockSpec(p["b2"].shape, lambda n: (0, 0))]
        has_ds = p["wd"] is not None
        if has_ds:
            wdf = p["wd"].reshape(ci, co)
            args += [wdf, p["bd"]]
            specs += [pl.BlockSpec(wdf.shape, lambda n: (0, 0)),
                      pl.BlockSpec(p["bd"].shape, lambda n: (0, 0))]
        meta.append((K, dilation, has_ds))
        rf += 2 * (K - 1) * dilation
    return args, specs, tuple(meta), rf


def bilat_tcn_forward(x, params):
    """x: (N, C, T) PyTorch Conv1d layout -> (N*Lv, output_size)."""
    # TODO(synk): dropout layers are inference-mode identity; only the empty
    #             `sequence_lens` (eval) path is implemented.
    eff_c, eff_nc = params["eff_hist_c"], params["eff_hist_nc"]
    N, Ci, T = x.shape
    # Direction slicing / flip of the raw (few-channel) input is cheap XLA glue;
    # every per-block activation stays inside the single kernel below.
    x_c = jnp.transpose(x[:, :, :T - eff_nc], (0, 2, 1))                # (N, L_c, Ci)
    x_nc = jnp.transpose(jnp.flip(x[:, :, eff_c:], axis=2), (0, 2, 1))  # (N, L_nc, Ci)
    L_c, L_nc = x_c.shape[1], x_nc.shape[1]

    c_args, c_specs, c_meta, rf_c = _stack_args(params["tcn_c"])
    nc_args, nc_specs, nc_meta, rf_nc = _stack_args(params["tcn_nc"])
    assert eff_c >= rf_c and eff_nc >= rf_nc, (
        "eff_hist must cover the TCN receptive field")
    Lv = L_c - eff_c
    assert Lv == L_nc - eff_nc and Lv > 0, "sequence too short for eff_hist"
    Out = params["wc"].shape[1]

    in_specs = (
        [pl.BlockSpec((1, L_c, Ci), lambda n: (n, 0, 0)),
         pl.BlockSpec((1, L_nc, Ci), lambda n: (n, 0, 0))]
        + c_specs + nc_specs
        + [pl.BlockSpec(params["wc"].shape, lambda n: (0, 0)),
           pl.BlockSpec(params["wnc"].shape, lambda n: (0, 0)),
           pl.BlockSpec(params["b_lin"].shape, lambda n: (0, 0))])
    args = ([x_c, x_nc] + c_args + nc_args
            + [params["wc"], params["wnc"], params["b_lin"]])

    kernel = functools.partial(
        _bilat_tcn_kernel, c_blocks=c_meta, nc_blocks=nc_meta,
        drop_c=eff_c - rf_c, drop_nc=eff_nc - rf_nc)

    out = pl.pallas_call(
        kernel,
        out_shape=jax.ShapeDtypeStruct((N, Lv, Out), x.dtype),
        grid=(N,),
        in_specs=in_specs,
        out_specs=pl.BlockSpec((1, Lv, Out), lambda n: (n, 0, 0)),
        compiler_params=pltpu.CompilerParams(
            dimension_semantics=("parallel",),
            vmem_limit_bytes=32 * 1024 * 1024),   # explicit (v5e default is 16 MiB)
    )(*args)
    return out.reshape(N * Lv, Out)               # batch-major rows (as torch.cat)


# ----------------------------------------------------------------------------
# Parameter construction (deterministic, synthetic) — plain-JAX glue
# ----------------------------------------------------------------------------
def _init_weightnorm_conv(key, ci, co, k, std=0.01):
    """Fold weight_norm (w = g * v / ||v||, dim=0) into an effective weight."""
    kv, kg, kb = jax.random.split(key, 3)
    v = jax.random.normal(kv, (co, ci, k), jnp.float32) * std      # torch (Co, Ci, K)
    g = jnp.abs(jax.random.normal(kg, (co,), jnp.float32)) + 0.5
    norm = jnp.sqrt(jnp.sum(v * v, axis=(1, 2), keepdims=True)) + 1e-12
    w_eff = v / norm * g[:, None, None]
    b = jax.random.normal(kb, (1, co), jnp.float32) * 0.01
    return jnp.transpose(w_eff, (2, 1, 0)), b                      # -> (K, Ci, Co)


def init_tcn_params(key, num_inputs, num_channels, kernel_size):
    params = []
    for i, co in enumerate(num_channels):
        ci = num_inputs if i == 0 else num_channels[i - 1]
        key, k1, k2, kd = jax.random.split(key, 4)
        w1, b1 = _init_weightnorm_conv(k1, ci, co, kernel_size)
        w2, b2 = _init_weightnorm_conv(k2, co, co, kernel_size)
        if ci != co:
            kdw, kdb = jax.random.split(kd)
            wd = jax.random.normal(kdw, (1, ci, co), jnp.float32) * 0.01
            bd = jax.random.normal(kdb, (1, co), jnp.float32) * 0.01
        else:
            wd, bd = None, None
        params.append(dict(w1=w1, b1=b1, w2=w2, b2=b2, wd=wd, bd=bd))
    return params


def init_bilat_params(key, input_size, num_ch_c, num_ch_nc, ks_c, ks_nc, out_size):
    k1, k2, k3, k4 = jax.random.split(key, 4)
    tcn_c = init_tcn_params(k1, input_size, num_ch_c, ks_c)
    tcn_nc = init_tcn_params(k2, input_size, num_ch_nc, ks_nc)
    cc, cnc = num_ch_c[-1], num_ch_nc[-1]
    wc = jax.random.normal(k3, (cc, out_size), jnp.float32) * 0.01
    knc, kb = jax.random.split(k4)
    wnc = jax.random.normal(knc, (cnc, out_size), jnp.float32) * 0.01
    b_lin = jax.random.normal(kb, (1, out_size), jnp.float32) * 0.01
    eff_c = 2 * (ks_c - 1) * (2 ** len(num_ch_c) - 1)
    eff_nc = 2 * (ks_nc - 1) * (2 ** len(num_ch_nc) - 1)
    return dict(tcn_c=tcn_c, tcn_nc=tcn_nc, wc=wc, wnc=wnc, b_lin=b_lin,
                eff_hist_c=eff_c, eff_hist_nc=eff_nc)


# ----------------------------------------------------------------------------
# Pure-JAX reference (padded-conv formulation, as in PyTorch) for correctness
# ----------------------------------------------------------------------------
def _ref_bilat_tcn(x, params):
    def conv(inp, w, b, dil):                 # inp: (N, L, Ci); w: (K, Ci, Co)
        K = w.shape[0]
        pad = (K - 1) * dil
        L = inp.shape[1]
        xp = jnp.pad(inp, ((0, 0), (pad, 0), (0, 0)))
        out = sum(jnp.einsum("nlc,cd->nld", xp[:, t * dil: t * dil + L, :], w[t])
                  for t in range(K))
        return out + b[None, :, :]

    def tcn(inp_ncl, blocks):
        h = jnp.transpose(inp_ncl, (0, 2, 1))
        for i, p in enumerate(blocks):
            d = 2 ** i
            o = jax.nn.relu(conv(h, p["w1"], p["b1"], d))
            o = jax.nn.relu(conv(o, p["w2"], p["b2"], d))
            r = h if p["wd"] is None else conv(h, p["wd"], p["bd"], 1)
            h = jax.nn.relu(o + r)
        return h

    eff_c, eff_nc = params["eff_hist_c"], params["eff_hist_nc"]
    T = x.shape[2]
    y_c = tcn(x[:, :, :T - eff_nc], params["tcn_c"])
    y_nc = tcn(jnp.flip(x[:, :, eff_c:], axis=2), params["tcn_nc"])
    yc_v, ync_v = y_c[:, eff_c:, :], y_nc[:, eff_nc:, :]
    N, Lv, _ = yc_v.shape
    y1 = jnp.concatenate([yc_v.reshape(N * Lv, -1), ync_v.reshape(N * Lv, -1)], axis=1)
    w = jnp.concatenate([params["wc"], params["wnc"]], axis=0)
    return y1 @ w + params["b_lin"]


if __name__ == "__main__":
    N, C_IN, T = 2, 4, 24
    NUM_CH_C = [8, 8]        # two TemporalBlocks per TCN: dilations 1, 2
    NUM_CH_NC = [8, 8]
    KS_C = KS_NC = 2
    OUT = 2

    key = jax.random.PRNGKey(0)
    kx, kp = jax.random.split(key)
    x = jax.random.normal(kx, (N, C_IN, T), jnp.float32)   # PyTorch (N, C, L) layout
    params = init_bilat_params(kp, C_IN, NUM_CH_C, NUM_CH_NC, KS_C, KS_NC, OUT)

    Lv = T - params["eff_hist_c"] - params["eff_hist_nc"]
    assert Lv > 0, "sequence too short for the chosen effective histories"

    out = jax.block_until_ready(bilat_tcn_forward(x, params))
    ref = jax.block_until_ready(_ref_bilat_tcn(x, params))

    assert out.shape == (N * Lv, OUT), out.shape
    max_err = float(jnp.max(jnp.abs(out - ref)))
    assert jnp.allclose(out, ref, atol=1e-4, rtol=1e-3), f"mismatch vs reference: {max_err}"
    print("KERNEL_OK")
</pallas_src>

<mosaic_0001>
module attributes {stable_mosaic.version = 11 : i64} {
  func.func @_bilat_tcn_kernel(%arg0: i32, %arg1: memref<1x18x4xf32, #tpu.memory_space<vmem>>, %arg2: memref<1x18x4xf32, #tpu.memory_space<vmem>>, %arg3: memref<8x8xf32, #tpu.memory_space<vmem>>, %arg4: memref<1x8xf32, #tpu.memory_space<vmem>>, %arg5: memref<16x8xf32, #tpu.memory_space<vmem>>, %arg6: memref<1x8xf32, #tpu.memory_space<vmem>>, %arg7: memref<4x8xf32, #tpu.memory_space<vmem>>, %arg8: memref<1x8xf32, #tpu.memory_space<vmem>>, %arg9: memref<16x8xf32, #tpu.memory_space<vmem>>, %arg10: memref<1x8xf32, #tpu.memory_space<vmem>>, %arg11: memref<16x8xf32, #tpu.memory_space<vmem>>, %arg12: memref<1x8xf32, #tpu.memory_space<vmem>>, %arg13: memref<8x8xf32, #tpu.memory_space<vmem>>, %arg14: memref<1x8xf32, #tpu.memory_space<vmem>>, %arg15: memref<16x8xf32, #tpu.memory_space<vmem>>, %arg16: memref<1x8xf32, #tpu.memory_space<vmem>>, %arg17: memref<4x8xf32, #tpu.memory_space<vmem>>, %arg18: memref<1x8xf32, #tpu.memory_space<vmem>>, %arg19: memref<16x8xf32, #tpu.memory_space<vmem>>, %arg20: memref<1x8xf32, #tpu.memory_space<vmem>>, %arg21: memref<16x8xf32, #tpu.memory_space<vmem>>, %arg22: memref<1x8xf32, #tpu.memory_space<vmem>>, %arg23: memref<8x2xf32, #tpu.memory_space<vmem>>, %arg24: memref<8x2xf32, #tpu.memory_space<vmem>>, %arg25: memref<1x2xf32, #tpu.memory_space<vmem>>, %arg26: memref<1x12x2xf32, #tpu.memory_space<vmem>>) attributes {dimension_semantics = [#tpu.dimension_semantics<parallel>], iteration_bounds = array<i64: 2>, scalar_prefetch = 0 : i64, scratch_operands = 0 : i64, tpu.core_type = #tpu.core_type<tc>, window_params = [{transform_indices = @transform_0, window_bounds = array<i64: 1, 18, 4>}, {transform_indices = @transform_1, window_bounds = array<i64: 1, 18, 4>}, {pipeline_mode = #tpu.pipeline_mode<synchronous>, transform_indices = @transform_2, window_bounds = array<i64: 8, 8>}, {pipeline_mode = #tpu.pipeline_mode<synchronous>, transform_indices = @transform_3, window_bounds = array<i64: 1, 8>}, {pipeline_mode = #tpu.pipeline_mode<synchronous>, transform_indices = @transform_4, window_bounds = array<i64: 16, 8>}, {pipeline_mode = #tpu.pipeline_mode<synchronous>, transform_indices = @transform_5, window_bounds = array<i64: 1, 8>}, {pipeline_mode = #tpu.pipeline_mode<synchronous>, transform_indices = @transform_6, window_bounds = array<i64: 4, 8>}, {pipeline_mode = #tpu.pipeline_mode<synchronous>, transform_indices = @transform_7, window_bounds = array<i64: 1, 8>}, {pipeline_mode = #tpu.pipeline_mode<synchronous>, transform_indices = @transform_8, window_bounds = array<i64: 16, 8>}, {pipeline_mode = #tpu.pipeline_mode<synchronous>, transform_indices = @transform_9, window_bounds = array<i64: 1, 8>}, {pipeline_mode = #tpu.pipeline_mode<synchronous>, transform_indices = @transform_10, window_bounds = array<i64: 16, 8>}, {pipeline_mode = #tpu.pipeline_mode<synchronous>, transform_indices = @transform_11, window_bounds = array<i64: 1, 8>}, {pipeline_mode = #tpu.pipeline_mode<synchronous>, transform_indices = @transform_12, window_bounds = array<i64: 8, 8>}, {pipeline_mode = #tpu.pipeline_mode<synchronous>, transform_indices = @transform_13, window_bounds = array<i64: 1, 8>}, {pipeline_mode = #tpu.pipeline_mode<synchronous>, transform_indices = @transform_14, window_bounds = array<i64: 16, 8>}, {pipeline_mode = #tpu.pipeline_mode<synchronous>, transform_indices = @transform_15, window_bounds = array<i64: 1, 8>}, {pipeline_mode = #tpu.pipeline_mode<synchronous>, transform_indices = @transform_16, window_bounds = array<i64: 4, 8>}, {pipeline_mode = #tpu.pipeline_mode<synchronous>, transform_indices = @transform_17, window_bounds = array<i64: 1, 8>}, {pipeline_mode = #tpu.pipeline_mode<synchronous>, transform_indices = @transform_18, window_bounds = array<i64: 16, 8>}, {pipeline_mode = #tpu.pipeline_mode<synchronous>, transform_indices = @transform_19, window_bounds = array<i64: 1, 8>}, {pipeline_mode = #tpu.pipeline_mode<synchronous>, transform_indices = @transform_20, window_bounds = array<i64: 16, 8>}, {pipeline_mode = #tpu.pipeline_mode<synchronous>, transform_indices = @transform_21, window_bounds = array<i64: 1, 8>}, {pipeline_mode = #tpu.pipeline_mode<synchronous>, transform_indices = @transform_22, window_bounds = array<i64: 8, 2>}, {pipeline_mode = #tpu.pipeline_mode<synchronous>, transform_indices = @transform_23, window_bounds = array<i64: 8, 2>}, {pipeline_mode = #tpu.pipeline_mode<synchronous>, transform_indices = @transform_24, window_bounds = array<i64: 1, 2>}, {transform_indices = @transform_25, window_bounds = array<i64: 1, 12, 2>}]} {
    %c0 = arith.constant 0 : index
    %c0_0 = arith.constant 0 : index
    %c0_1 = arith.constant 0 : index
    %0 = vector.load %arg1[%c0, %c0_0, %c0_1] : memref<1x18x4xf32, #tpu.memory_space<vmem>>, vector<1x18x4xf32>
    %1 = vector.shape_cast %0 : vector<1x18x4xf32> to vector<18x4xf32>
    %c0_2 = arith.constant 0 : index
    %c0_3 = arith.constant 0 : index
    %2 = vector.load %arg3[%c0_2, %c0_3] : memref<8x8xf32, #tpu.memory_space<vmem>>, vector<8x8xf32>
    %c0_4 = arith.constant 0 : index
    %c0_5 = arith.constant 0 : index
    %3 = vector.load %arg4[%c0_4, %c0_5] : memref<1x8xf32, #tpu.memory_space<vmem>>, vector<1x8xf32>
    %c0_6 = arith.constant 0 : index
    %c0_7 = arith.constant 0 : index
    %4 = vector.load %arg5[%c0_6, %c0_7] : memref<16x8xf32, #tpu.memory_space<vmem>>, vector<16x8xf32>
    %c0_8 = arith.constant 0 : index
    %c0_9 = arith.constant 0 : index
    %5 = vector.load %arg6[%c0_8, %c0_9] : memref<1x8xf32, #tpu.memory_space<vmem>>, vector<1x8xf32>
    %c0_10 = arith.constant 0 : index
    %c0_11 = arith.constant 0 : index
    %6 = vector.load %arg7[%c0_10, %c0_11] : memref<4x8xf32, #tpu.memory_space<vmem>>, vector<4x8xf32>
    %c0_12 = arith.constant 0 : index
    %c0_13 = arith.constant 0 : index
    %7 = vector.load %arg8[%c0_12, %c0_13] : memref<1x8xf32, #tpu.memory_space<vmem>>, vector<1x8xf32>
    %8 = vector.extract_strided_slice %1 {offsets = [0, 0], sizes = [17, 4], strides = [1, 1]} : vector<18x4xf32> to vector<17x4xf32>
    %9 = vector.extract_strided_slice %1 {offsets = [1, 0], sizes = [17, 4], strides = [1, 1]} : vector<18x4xf32> to vector<17x4xf32>
    %10 = tpu.concatenate %8, %9 in 1 : vector<17x4xf32>, vector<17x4xf32> -> vector<17x8xf32>
    %cst = arith.constant dense<0.000000e+00> : vector<17x8xf32>
    %11 = tpu.matmul %10, %2, %cst {dimension_numbers = #tpu.dot_dimension_numbers<[1], [0], [0], [1], [0, 0, 1, 1], [], []>} : vector<17x8xf32>, vector<8x8xf32>, vector<17x8xf32> -> vector<17x8xf32>
    %12 = vector.broadcast %3 : vector<1x8xf32> to vector<17x8xf32>
    %13 = arith.addf %11, %12 : vector<17x8xf32>
    %cst_14 = arith.constant 0.000000e+00 : f32
    %14 = vector.broadcast %cst_14 : f32 to vector<17x8xf32>
    %15 = arith.maximumf %13, %14 : vector<17x8xf32>
    %16 = vector.extract_strided_slice %15 {offsets = [0, 0], sizes = [16, 8], strides = [1, 1]} : vector<17x8xf32> to vector<16x8xf32>
    %17 = vector.extract_strided_slice %15 {offsets = [1, 0], sizes = [16, 8], strides = [1, 1]} : vector<17x8xf32> to vector<16x8xf32>
    %18 = tpu.concatenate %16, %17 in 1 : vector<16x8xf32>, vector<16x8xf32> -> vector<16x16xf32>
    %cst_15 = arith.constant dense<0.000000e+00> : vector<16x8xf32>
    %19 = tpu.matmul %18, %4, %cst_15 {dimension_numbers = #tpu.dot_dimension_numbers<[1], [0], [0], [1], [0, 0, 1, 1], [], []>} : vector<16x16xf32>, vector<16x8xf32>, vector<16x8xf32> -> vector<16x8xf32>
    %20 = vector.broadcast %5 : vector<1x8xf32> to vector<16x8xf32>
    %21 = arith.addf %19, %20 : vector<16x8xf32>
    %cst_16 = arith.constant 0.000000e+00 : f32
    %22 = vector.broadcast %cst_16 : f32 to vector<16x8xf32>
    %23 = arith.maximumf %21, %22 : vector<16x8xf32>
    %24 = vector.extract_strided_slice %1 {offsets = [2, 0], sizes = [16, 4], strides = [1, 1]} : vector<18x4xf32> to vector<16x4xf32>
    %cst_17 = arith.constant dense<0.000000e+00> : vector<16x8xf32>
    %25 = tpu.matmul %24, %6, %cst_17 {dimension_numbers = #tpu.dot_dimension_numbers<[1], [0], [0], [1], [0, 0, 1, 1], [], []>} : vector<16x4xf32>, vector<4x8xf32>, vector<16x8xf32> -> vector<16x8xf32>
    %26 = vector.broadcast %7 : vector<1x8xf32> to vector<16x8xf32>
    %27 = arith.addf %25, %26 : vector<16x8xf32>
    %28 = arith.addf %23, %27 : vector<16x8xf32>
    %cst_18 = arith.constant 0.000000e+00 : f32
    %29 = vector.broadcast %cst_18 : f32 to vector<16x8xf32>
    %30 = arith.maximumf %28, %29 : vector<16x8xf32>
    %c0_19 = arith.constant 0 : index
    %c0_20 = arith.constant 0 : index
    %31 = vector.load %arg9[%c0_19, %c0_20] : memref<16x8xf32, #tpu.memory_space<vmem>>, vector<16x8xf32>
    %c0_21 = arith.constant 0 : index
    %c0_22 = arith.constant 0 : index
    %32 = vector.load %arg10[%c0_21, %c0_22] : memref<1x8xf32, #tpu.memory_space<vmem>>, vector<1x8xf32>
    %c0_23 = arith.constant 0 : index
    %c0_24 = arith.constant 0 : index
    %33 = vector.load %arg11[%c0_23, %c0_24] : memref<16x8xf32, #tpu.memory_space<vmem>>, vector<16x8xf32>
    %c0_25 = arith.constant 0 : index
    %c0_26 = arith.constant 0 : index
    %34 = vector.load %arg12[%c0_25, %c0_26] : memref<1x8xf32, #tpu.memory_space<vmem>>, vector<1x8xf32>
    %35 = vector.extract_strided_slice %30 {offsets = [0, 0], sizes = [14, 8], strides = [1, 1]} : vector<16x8xf32> to vector<14x8xf32>
    %36 = vector.extract_strided_slice %30 {offsets = [2, 0], sizes = [14, 8], strides = [1, 1]} : vector<16x8xf32> to vector<14x8xf32>
    %37 = tpu.concatenate %35, %36 in 1 : vector<14x8xf32>, vector<14x8xf32> -> vector<14x16xf32>
    %cst_27 = arith.constant dense<0.000000e+00> : vector<14x8xf32>
    %38 = tpu.matmul %37, %31, %cst_27 {dimension_numbers = #tpu.dot_dimension_numbers<[1], [0], [0], [1], [0, 0, 1, 1], [], []>} : vector<14x16xf32>, vector<16x8xf32>, vector<14x8xf32> -> vector<14x8xf32>
    %39 = vector.broadcast %32 : vector<1x8xf32> to vector<14x8xf32>
    %40 = arith.addf %38, %39 : vector<14x8xf32>
    %cst_28 = arith.constant 0.000000e+00 : f32
    %41 = vector.broadcast %cst_28 : f32 to vector<14x8xf32>
    %42 = arith.maximumf %40, %41 : vector<14x8xf32>
    %43 = vector.extract_strided_slice %42 {offsets = [0, 0], sizes = [12, 8], strides = [1, 1]} : vector<14x8xf32> to vector<12x8xf32>
    %44 = vector.extract_strided_slice %42 {offsets = [2, 0], sizes = [12, 8], strides = [1, 1]} : vector<14x8xf32> to vector<12x8xf32>
    %45 = tpu.concatenate %43, %44 in 1 : vector<12x8xf32>, vector<12x8xf32> -> vector<12x16xf32>
    %cst_29 = arith.constant dense<0.000000e+00> : vector<12x8xf32>
    %46 = tpu.matmul %45, %33, %cst_29 {dimension_numbers = #tpu.dot_dimension_numbers<[1], [0], [0], [1], [0, 0, 1, 1], [], []>} : vector<12x16xf32>, vector<16x8xf32>, vector<12x8xf32> -> vector<12x8xf32>
    %47 = vector.broadcast %34 : vector<1x8xf32> to vector<12x8xf32>
    %48 = arith.addf %46, %47 : vector<12x8xf32>
    %cst_30 = arith.constant 0.000000e+00 : f32
    %49 = vector.broadcast %cst_30 : f32 to vector<12x8xf32>
    %50 = arith.maximumf %48, %49 : vector<12x8xf32>
    %51 = vector.extract_strided_slice %30 {offsets = [4, 0], sizes = [12, 8], strides = [1, 1]} : vector<16x8xf32> to vector<12x8xf32>
    %52 = arith.addf %50, %51 : vector<12x8xf32>
    %cst_31 = arith.constant 0.000000e+00 : f32
    %53 = vector.broadcast %cst_31 : f32 to vector<12x8xf32>
    %54 = arith.maximumf %52, %53 : vector<12x8xf32>
    %c0_32 = arith.constant 0 : index
    %c0_33 = arith.constant 0 : index
    %c0_34 = arith.constant 0 : index
    %55 = vector.load %arg2[%c0_32, %c0_33, %c0_34] : memref<1x18x4xf32, #tpu.memory_space<vmem>>, vector<1x18x4xf32>
    %56 = vector.shape_cast %55 : vector<1x18x4xf32> to vector<18x4xf32>
    %c0_35 = arith.constant 0 : index
    %c0_36 = arith.constant 0 : index
    %57 = vector.load %arg13[%c0_35, %c0_36] : memref<8x8xf32, #tpu.memory_space<vmem>>, vector<8x8xf32>
    %c0_37 = arith.constant 0 : index
    %c0_38 = arith.constant 0 : index
    %58 = vector.load %arg14[%c0_37, %c0_38] : memref<1x8xf32, #tpu.memory_space<vmem>>, vector<1x8xf32>
    %c0_39 = arith.constant 0 : index
    %c0_40 = arith.constant 0 : index
    %59 = vector.load %arg15[%c0_39, %c0_40] : memref<16x8xf32, #tpu.memory_space<vmem>>, vector<16x8xf32>
    %c0_41 = arith.constant 0 : index
    %c0_42 = arith.constant 0 : index
    %60 = vector.load %arg16[%c0_41, %c0_42] : memref<1x8xf32, #tpu.memory_space<vmem>>, vector<1x8xf32>
    %c0_43 = arith.constant 0 : index
    %c0_44 = arith.constant 0 : index
    %61 = vector.load %arg17[%c0_43, %c0_44] : memref<4x8xf32, #tpu.memory_space<vmem>>, vector<4x8xf32>
    %c0_45 = arith.constant 0 : index
    %c0_46 = arith.constant 0 : index
    %62 = vector.load %arg18[%c0_45, %c0_46] : memref<1x8xf32, #tpu.memory_space<vmem>>, vector<1x8xf32>
    %63 = vector.extract_strided_slice %56 {offsets = [0, 0], sizes = [17, 4], strides = [1, 1]} : vector<18x4xf32> to vector<17x4xf32>
    %64 = vector.extract_strided_slice %56 {offsets = [1, 0], sizes = [17, 4], strides = [1, 1]} : vector<18x4xf32> to vector<17x4xf32>
    %65 = tpu.concatenate %63, %64 in 1 : vector<17x4xf32>, vector<17x4xf32> -> vector<17x8xf32>
    %cst_47 = arith.constant dense<0.000000e+00> : vector<17x8xf32>
    %66 = tpu.matmul %65, %57, %cst_47 {dimension_numbers = #tpu.dot_dimension_numbers<[1], [0], [0], [1], [0, 0, 1, 1], [], []>} : vector<17x8xf32>, vector<8x8xf32>, vector<17x8xf32> -> vector<17x8xf32>
    %67 = vector.broadcast %58 : vector<1x8xf32> to vector<17x8xf32>
    %68 = arith.addf %66, %67 : vector<17x8xf32>
    %cst_48 = arith.constant 0.000000e+00 : f32
    %69 = vector.broadcast %cst_48 : f32 to vector<17x8xf32>
    %70 = arith.maximumf %68, %69 : vector<17x8xf32>
    %71 = vector.extract_strided_slice %70 {offsets = [0, 0], sizes = [16, 8], strides = [1, 1]} : vector<17x8xf32> to vector<16x8xf32>
    %72 = vector.extract_strided_slice %70 {offsets = [1, 0], sizes = [16, 8], strides = [1, 1]} : vector<17x8xf32> to vector<16x8xf32>
    %73 = tpu.concatenate %71, %72 in 1 : vector<16x8xf32>, vector<16x8xf32> -> vector<16x16xf32>
    %cst_49 = arith.constant dense<0.000000e+00> : vector<16x8xf32>
    %74 = tpu.matmul %73, %59, %cst_49 {dimension_numbers = #tpu.dot_dimension_numbers<[1], [0], [0], [1], [0, 0, 1, 1], [], []>} : vector<16x16xf32>, vector<16x8xf32>, vector<16x8xf32> -> vector<16x8xf32>
    %75 = vector.broadcast %60 : vector<1x8xf32> to vector<16x8xf32>
    %76 = arith.addf %74, %75 : vector<16x8xf32>
    %cst_50 = arith.constant 0.000000e+00 : f32
    %77 = vector.broadcast %cst_50 : f32 to vector<16x8xf32>
    %78 = arith.maximumf %76, %77 : vector<16x8xf32>
    %79 = vector.extract_strided_slice %56 {offsets = [2, 0], sizes = [16, 4], strides = [1, 1]} : vector<18x4xf32> to vector<16x4xf32>
    %cst_51 = arith.constant dense<0.000000e+00> : vector<16x8xf32>
    %80 = tpu.matmul %79, %61, %cst_51 {dimension_numbers = #tpu.dot_dimension_numbers<[1], [0], [0], [1], [0, 0, 1, 1], [], []>} : vector<16x4xf32>, vector<4x8xf32>, vector<16x8xf32> -> vector<16x8xf32>
    %81 = vector.broadcast %62 : vector<1x8xf32> to vector<16x8xf32>
    %82 = arith.addf %80, %81 : vector<16x8xf32>
    %83 = arith.addf %78, %82 : vector<16x8xf32>
    %cst_52 = arith.constant 0.000000e+00 : f32
    %84 = vector.broadcast %cst_52 : f32 to vector<16x8xf32>
    %85 = arith.maximumf %83, %84 : vector<16x8xf32>
    %c0_53 = arith.constant 0 : index
    %c0_54 = arith.constant 0 : index
    %86 = vector.load %arg19[%c0_53, %c0_54] : memref<16x8xf32, #tpu.memory_space<vmem>>, vector<16x8xf32>
    %c0_55 = arith.constant 0 : index
    %c0_56 = arith.constant 0 : index
    %87 = vector.load %arg20[%c0_55, %c0_56] : memref<1x8xf32, #tpu.memory_space<vmem>>, vector<1x8xf32>
    %c0_57 = arith.constant 0 : index
    %c0_58 = arith.constant 0 : index
    %88 = vector.load %arg21[%c0_57, %c0_58] : memref<16x8xf32, #tpu.memory_space<vmem>>, vector<16x8xf32>
    %c0_59 = arith.constant 0 : index
    %c0_60 = arith.constant 0 : index
    %89 = vector.load %arg22[%c0_59, %c0_60] : memref<1x8xf32, #tpu.memory_space<vmem>>, vector<1x8xf32>
    %90 = vector.extract_strided_slice %85 {offsets = [0, 0], sizes = [14, 8], strides = [1, 1]} : vector<16x8xf32> to vector<14x8xf32>
    %91 = vector.extract_strided_slice %85 {offsets = [2, 0], sizes = [14, 8], strides = [1, 1]} : vector<16x8xf32> to vector<14x8xf32>
    %92 = tpu.concatenate %90, %91 in 1 : vector<14x8xf32>, vector<14x8xf32> -> vector<14x16xf32>
    %cst_61 = arith.constant dense<0.000000e+00> : vector<14x8xf32>
    %93 = tpu.matmul %92, %86, %cst_61 {dimension_numbers = #tpu.dot_dimension_numbers<[1], [0], [0], [1], [0, 0, 1, 1], [], []>} : vector<14x16xf32>, vector<16x8xf32>, vector<14x8xf32> -> vector<14x8xf32>
    %94 = vector.broadcast %87 : vector<1x8xf32> to vector<14x8xf32>
    %95 = arith.addf %93, %94 : vector<14x8xf32>
    %cst_62 = arith.constant 0.000000e+00 : f32
    %96 = vector.broadcast %cst_62 : f32 to vector<14x8xf32>
    %97 = arith.maximumf %95, %96 : vector<14x8xf32>
    %98 = vector.extract_strided_slice %97 {offsets = [0, 0], sizes = [12, 8], strides = [1, 1]} : vector<14x8xf32> to vector<12x8xf32>
    %99 = vector.extract_strided_slice %97 {offsets = [2, 0], sizes = [12, 8], strides = [1, 1]} : vector<14x8xf32> to vector<12x8xf32>
    %100 = tpu.concatenate %98, %99 in 1 : vector<12x8xf32>, vector<12x8xf32> -> vector<12x16xf32>
    %cst_63 = arith.constant dense<0.000000e+00> : vector<12x8xf32>
    %101 = tpu.matmul %100, %88, %cst_63 {dimension_numbers = #tpu.dot_dimension_numbers<[1], [0], [0], [1], [0, 0, 1, 1], [], []>} : vector<12x16xf32>, vector<16x8xf32>, vector<12x8xf32> -> vector<12x8xf32>
    %102 = vector.broadcast %89 : vector<1x8xf32> to vector<12x8xf32>
    %103 = arith.addf %101, %102 : vector<12x8xf32>
    %cst_64 = arith.constant 0.000000e+00 : f32
    %104 = vector.broadcast %cst_64 : f32 to vector<12x8xf32>
    %105 = arith.maximumf %103, %104 : vector<12x8xf32>
    %106 = vector.extract_strided_slice %85 {offsets = [4, 0], sizes = [12, 8], strides = [1, 1]} : vector<16x8xf32> to vector<12x8xf32>
    %107 = arith.addf %105, %106 : vector<12x8xf32>
    %cst_65 = arith.constant 0.000000e+00 : f32
    %108 = vector.broadcast %cst_65 : f32 to vector<12x8xf32>
    %109 = arith.maximumf %107, %108 : vector<12x8xf32>
    %c0_66 = arith.constant 0 : index
    %c0_67 = arith.constant 0 : index
    %110 = vector.load %arg23[%c0_66, %c0_67] : memref<8x2xf32, #tpu.memory_space<vmem>>, vector<8x2xf32>
    %c0_68 = arith.constant 0 : index
    %c0_69 = arith.constant 0 : index
    %111 = vector.load %arg24[%c0_68, %c0_69] : memref<8x2xf32, #tpu.memory_space<vmem>>, vector<8x2xf32>
    %c0_70 = arith.constant 0 : index
    %c0_71 = arith.constant 0 : index
    %112 = vector.load %arg25[%c0_70, %c0_71] : memref<1x2xf32, #tpu.memory_space<vmem>>, vector<1x2xf32>
    %cst_72 = arith.constant dense<0.000000e+00> : vector<12x2xf32>
    %113 = tpu.matmul %54, %110, %cst_72 {dimension_numbers = #tpu.dot_dimension_numbers<[1], [0], [0], [1], [0, 0, 1, 1], [], []>} : vector<12x8xf32>, vector<8x2xf32>, vector<12x2xf32> -> vector<12x2xf32>
    %cst_73 = arith.constant dense<0.000000e+00> : vector<12x2xf32>
    %114 = tpu.matmul %109, %111, %cst_73 {dimension_numbers = #tpu.dot_dimension_numbers<[1], [0], [0], [1], [0, 0, 1, 1], [], []>} : vector<12x8xf32>, vector<8x2xf32>, vector<12x2xf32> -> vector<12x2xf32>
    %115 = arith.addf %113, %114 : vector<12x2xf32>
    %116 = vector.broadcast %112 : vector<1x2xf32> to vector<12x2xf32>
    %117 = arith.addf %115, %116 : vector<12x2xf32>
    %c0_74 = arith.constant 0 : index
    %c0_75 = arith.constant 0 : index
    %c0_76 = arith.constant 0 : index
    %118 = vector.load %arg26[%c0_74, %c0_75, %c0_76] : memref<1x12x2xf32, #tpu.memory_space<vmem>>, vector<1x12x2xf32>
    %119 = vector.shape_cast %118 : vector<1x12x2xf32> to vector<12x2xf32>
    %120 = vector.shape_cast %117 : vector<12x2xf32> to vector<1x12x2xf32>
    tpu.vector_store %arg26[%c0_74, %c0_75, %c0_76], %120 {strides = array<i32>} : memref<1x12x2xf32, #tpu.memory_space<vmem>>, vector<1x12x2xf32>,
    return
  }
  func.func @transform_0(%arg0: i32) -> (i32, i32, i32) {
    %c0_i32 = arith.constant 0 : i32
    %c0_i32_0 = arith.constant 0 : i32
    %c0_i32_1 = arith.constant 0 : i32
    return %arg0, %c0_i32, %c0_i32_0 : i32, i32, i32
  }
  func.func @transform_1(%arg0: i32) -> (i32, i32, i32) {
    %c0_i32 = arith.constant 0 : i32
    %c0_i32_0 = arith.constant 0 : i32
    %c0_i32_1 = arith.constant 0 : i32
    return %arg0, %c0_i32, %c0_i32_0 : i32, i32, i32
  }
  func.func @transform_2(%arg0: i32) -> (i32, i32) {
    %c0_i32 = arith.constant 0 : i32
    %c0_i32_0 = arith.constant 0 : i32
    %c0_i32_1 = arith.constant 0 : i32
    return %c0_i32, %c0_i32_0 : i32, i32
  }
  func.func @transform_3(%arg0: i32) -> (i32, i32) {
    %c0_i32 = arith.constant 0 : i32
    %c0_i32_0 = arith.constant 0 : i32
    %c0_i32_1 = arith.constant 0 : i32
    return %c0_i32, %c0_i32_0 : i32, i32
  }
  func.func @transform_4(%arg0: i32) -> (i32, i32) {
    %c0_i32 = arith.constant 0 : i32
    %c0_i32_0 = arith.constant 0 : i32
    %c0_i32_1 = arith.constant 0 : i32
    return %c0_i32, %c0_i32_0 : i32, i32
  }
  func.func @transform_5(%arg0: i32) -> (i32, i32) {
    %c0_i32 = arith.constant 0 : i32
    %c0_i32_0 = arith.constant 0 : i32
    %c0_i32_1 = arith.constant 0 : i32
    return %c0_i32, %c0_i32_0 : i32, i32
  }
  func.func @transform_6(%arg0: i32) -> (i32, i32) {
    %c0_i32 = arith.constant 0 : i32
    %c0_i32_0 = arith.constant 0 : i32
    %c0_i32_1 = arith.constant 0 : i32
    return %c0_i32, %c0_i32_0 : i32, i32
  }
  func.func @transform_7(%arg0: i32) -> (i32, i32) {
    %c0_i32 = arith.constant 0 : i32
    %c0_i32_0 = arith.constant 0 : i32
    %c0_i32_1 = arith.constant 0 : i32
    return %c0_i32, %c0_i32_0 : i32, i32
  }
  func.func @transform_8(%arg0: i32) -> (i32, i32) {
    %c0_i32 = arith.constant 0 : i32
    %c0_i32_0 = arith.constant 0 : i32
    %c0_i32_1 = arith.constant 0 : i32
    return %c0_i32, %c0_i32_0 : i32, i32
  }
  func.func @transform_9(%arg0: i32) -> (i32, i32) {
    %c0_i32 = arith.constant 0 : i32
    %c0_i32_0 = arith.constant 0 : i32
    %c0_i32_1 = arith.constant 0 : i32
    return %c0_i32, %c0_i32_0 : i32, i32
  }
  func.func @transform_10(%arg0: i32) -> (i32, i32) {
    %c0_i32 = arith.constant 0 : i32
    %c0_i32_0 = arith.constant 0 : i32
    %c0_i32_1 = arith.constant 0 : i32
    return %c0_i32, %c0_i32_0 : i32, i32
  }
  func.func @transform_11(%arg0: i32) -> (i32, i32) {
    %c0_i32 = arith.constant 0 : i32
    %c0_i32_0 = arith.constant 0 : i32
    %c0_i32_1 = arith.constant 0 : i32
    return %c0_i32, %c0_i32_0 : i32, i32
  }
  func.func @transform_12(%arg0: i32) -> (i32, i32) {
    %c0_i32 = arith.constant 0 : i32
    %c0_i32_0 = arith.constant 0 : i32
    %c0_i32_1 = arith.constant 0 : i32
    return %c0_i32, %c0_i32_0 : i32, i32
  }
  func.func @transform_13(%arg0: i32) -> (i32, i32) {
    %c0_i32 = arith.constant 0 : i32
    %c0_i32_0 = arith.constant 0 : i32
    %c0_i32_1 = arith.constant 0 : i32
    return %c0_i32, %c0_i32_0 : i32, i32
  }
  func.func @transform_14(%arg0: i32) -> (i32, i32) {
    %c0_i32 = arith.constant 0 : i32
    %c0_i32_0 = arith.constant 0 : i32
    %c0_i32_1 = arith.constant 0 : i32
    return %c0_i32, %c0_i32_0 : i32, i32
  }
  func.func @transform_15(%arg0: i32) -> (i32, i32) {
    %c0_i32 = arith.constant 0 : i32
    %c0_i32_0 = arith.constant 0 : i32
    %c0_i32_1 = arith.constant 0 : i32
    return %c0_i32, %c0_i32_0 : i32, i32
  }
  func.func @transform_16(%arg0: i32) -> (i32, i32) {
    %c0_i32 = arith.constant 0 : i32
    %c0_i32_0 = arith.constant 0 : i32
    %c0_i32_1 = arith.constant 0 : i32
    return %c0_i32, %c0_i32_0 : i32, i32
  }
  func.func @transform_17(%arg0: i32) -> (i32, i32) {
    %c0_i32 = arith.constant 0 : i32
    %c0_i32_0 = arith.constant 0 : i32
    %c0_i32_1 = arith.constant 0 : i32
    return %c0_i32, %c0_i32_0 : i32, i32
  }
  func.func @transform_18(%arg0: i32) -> (i32, i32) {
    %c0_i32 = arith.constant 0 : i32
    %c0_i32_0 = arith.constant 0 : i32
    %c0_i32_1 = arith.constant 0 : i32
    return %c0_i32, %c0_i32_0 : i32, i32
  }
  func.func @transform_19(%arg0: i32) -> (i32, i32) {
    %c0_i32 = arith.constant 0 : i32
    %c0_i32_0 = arith.constant 0 : i32
    %c0_i32_1 = arith.constant 0 : i32
    return %c0_i32, %c0_i32_0 : i32, i32
  }
  func.func @transform_20(%arg0: i32) -> (i32, i32) {
    %c0_i32 = arith.constant 0 : i32
    %c0_i32_0 = arith.constant 0 : i32
    %c0_i32_1 = arith.constant 0 : i32
    return %c0_i32, %c0_i32_0 : i32, i32
  }
  func.func @transform_21(%arg0: i32) -> (i32, i32) {
    %c0_i32 = arith.constant 0 : i32
    %c0_i32_0 = arith.constant 0 : i32
    %c0_i32_1 = arith.constant 0 : i32
    return %c0_i32, %c0_i32_0 : i32, i32
  }
  func.func @transform_22(%arg0: i32) -> (i32, i32) {
    %c0_i32 = arith.constant 0 : i32
    %c0_i32_0 = arith.constant 0 : i32
    %c0_i32_1 = arith.constant 0 : i32
    return %c0_i32, %c0_i32_0 : i32, i32
  }
  func.func @transform_23(%arg0: i32) -> (i32, i32) {
    %c0_i32 = arith.constant 0 : i32
    %c0_i32_0 = arith.constant 0 : i32
    %c0_i32_1 = arith.constant 0 : i32
    return %c0_i32, %c0_i32_0 : i32, i32
  }
  func.func @transform_24(%arg0: i32) -> (i32, i32) {
    %c0_i32 = arith.constant 0 : i32
    %c0_i32_0 = arith.constant 0 : i32
    %c0_i32_1 = arith.constant 0 : i32
    return %c0_i32, %c0_i32_0 : i32, i32
  }
  func.func @transform_25(%arg0: i32) -> (i32, i32, i32) {
    %c0_i32 = arith.constant 0 : i32
    %c0_i32_0 = arith.constant 0 : i32
    %c0_i32_1 = arith.constant 0 : i32
    return %arg0, %c0_i32, %c0_i32_0 : i32, i32, i32
  }
}

</mosaic_0001>

<bundles_post_ra>
// kernel: tpu_custom_call.1
= control target key start
LH: loop header
LB: loop body
LE: loop exit
PB: predicated region body
PF: predicated region fallthrough
CT: control target
= control target key end

     0   :  { %s2467_s29 = smov 0   ;;  %s2730_s0 = inlined_call_operand.vmem [shape: f32[2,18,4], index: 0, kind: input, shape index: {}]   ;;  %s2731_s1 = inlined_call_operand.vmem [shape: f32[2,18,4], index: 1, kind: input, shape index: {}]   ;;  %s2732_s2 = inlined_call_operand.vmem [shape: f32[8,8], index: 2, kind: input, shape index: {}]   ;;  %s2733_s3 = inlined_call_operand.vmem [shape: f32[1,8], index: 3, kind: input, shape index: {}]   ;;  %s2734_s4 = inlined_call_operand.vmem [shape: f32[16,8], index: 4, kind: input, shape index: {}]   ;;  %s2735_s5 = inlined_call_operand.vmem [shape: f32[1,8], index: 5, kind: input, shape index: {}]   ;;  %s2736_s6 = inlined_call_operand.vmem [shape: f32[4,8], index: 6, kind: input, shape index: {}]   ;;  %s2737_s7 = inlined_call_operand.vmem [shape: f32[1,8], index: 7, kind: input, shape index: {}]   ;;  %s2738_s8 = inlined_call_operand.vmem [shape: f32[16,8], index: 8, kind: input, shape index: {}]   ;;  %s2739_s9 = inlined_call_operand.vmem [shape: f32[1,8], index: 9, kind: input, shape index: {}]   ;;  %s2740_s10 = inlined_call_operand.vmem [shape: f32[16,8], index: 10, kind: input, shape index: {}]   ;;  %s2741_s11 = inlined_call_operand.vmem [shape: f32[1,8], index: 11, kind: input, shape index: {}]   ;;  %s2742_s12 = inlined_call_operand.vmem [shape: f32[8,8], index: 12, kind: input, shape index: {}]   ;;  %s2743_s13 = inlined_call_operand.vmem [shape: f32[1,8], index: 13, kind: input, shape index: {}]   ;;  %s2744_s14 = inlined_call_operand.vmem [shape: f32[16,8], index: 14, kind: input, shape index: {}]   ;;  %s2745_s15 = inlined_call_operand.vmem [shape: f32[1,8], index: 15, kind: input, shape index: {}]   ;;  %s2746_s16 = inlined_call_operand.vmem [shape: f32[4,8], index: 16, kind: input, shape index: {}]   ;;  %s2747_s17 = inlined_call_operand.vmem [shape: f32[1,8], index: 17, kind: input, shape index: {}]   ;;  %s2748_s18 = inlined_call_operand.vmem [shape: f32[16,8], index: 18, kind: input, shape index: {}]   ;;  %s2749_s19 = inlined_call_operand.vmem [shape: f32[1,8], index: 19, kind: input, shape index: {}]   ;;  %s2750_s20 = inlined_call_operand.vmem [shape: f32[16,8], index: 20, kind: input, shape index: {}]   ;;  %s2751_s21 = inlined_call_operand.vmem [shape: f32[1,8], index: 21, kind: input, shape index: {}]   ;;  %s2752_s22 = inlined_call_operand.vmem [shape: f32[8,2], index: 22, kind: input, shape index: {}]   ;;  %s2753_s23 = inlined_call_operand.vmem [shape: f32[8,2], index: 23, kind: input, shape index: {}]   ;;  %s2754_s24 = inlined_call_operand.vmem [shape: f32[1,2], index: 24, kind: input, shape index: {}]   ;;  %s2755_s25 = inlined_call_operand.vmem [shape: f32[2,12,2], index: 25, kind: output, shape index: {}]  }
   0x1   :  { %2762 = sst [smem:[#allocation2_spill]] %s2730_s0 }
   0x2   :  { %2763 = sst [smem:[#allocation3_spill]] %s2731_s1 }
   0x3   :  { %2764 = sst [smem:[#allocation4_spill]] %s2732_s2 }
   0x4   :  { %2765 = sst [smem:[#allocation5_spill]] %s2733_s3 }
   0x5   :  { %2766 = sst [smem:[#allocation6_spill]] %s2734_s4 }
   0x6   :  { %2767 = sst [smem:[#allocation7_spill]] %s2735_s5 }
   0x7   :  { %2768 = sst [smem:[#allocation8_spill]] %s2736_s6 }
   0x8   :  { %2769 = sst [smem:[#allocation9_spill]] %s2737_s7 }
   0x9   :  { %2770 = sst [smem:[#allocation10_spill]] %s2738_s8 }
   0xa   :  { %2771 = sst [smem:[#allocation11_spill]] %s2739_s9 }
   0xb LB: > { %s2133_s2 = sadd.s32 4294967295, %s2331_s29   ;;  %p2137_p0 = scmp.ge.s32.totalorder %s2331_s29, 1  ;;  %s2331_s29 = sphi %s2467_s29, %s35_s29  }
   0xc   : > { %p697_p1 = scmp.lt.s32.totalorder %s2331_s29, 3 }
   0xe   : > { %p698_p2 = pnand %p2137_p0, %p697_p1 }
   0xf   : > { %p770_p3 = scmp.lt.s32.totalorder (!%p698_p2), %s2133_s2, 1  ;;  %s2772_s7 = sld [smem:[#allocation4_spill]] (!%p698_p2) }
  0x10   : > { %701 = sbr.rel (%p698_p2) target bundleno = 2170 (0x87a), region = 120  ;;  %s2773_s8 = sld [smem:[#allocation2_spill]] (!%p698_p2) }
  0x11   : > { %s2758_s4 = smov (!%p698_p2), 4   ;;  %s2774_s5 = sld [smem:[#allocation5_spill]] (!%p698_p2) }
  0x12   : > { %s2775_s30 = sld [smem:[#allocation6_spill]] (!%p698_p2)  ;;  %s2760_s28 = smov (!%p698_p2), 8  }
  0x13   : > { %s2777_s0 = sld [smem:[#allocation7_spill]] (!%p698_p2) }
  0x14   : > { %s2778_s26 = sld [smem:[#allocation10_spill]] (!%p698_p2) }
  0x15   : > { %v788_v0 = vld [vmem:[%s2772_s7] sm:$0xff]  ;;  %v2333_v1 = vmov 0.0   ;;  %s2785_s2 = smov (!%p770_p3, %s2133_s2), 1  ;;  %vm2334_vm0 = vmmov 0   ;;  %vm798_vm1 = vcmask 1046528   ;;  %vm813_vm2 = vcmask 31744  }
  0x16   : > { %2228 = vmatprep.subr.mxu0 %v2333_v1  ;;  %2230 = vmatprep.mubr.msk.f32.mxu0 %vm2334_vm0, %v2333_v1  ;;  %s2312_s3 = smul.u32 24, %s2785_s2  ;;  %vm823_vm3 = vcmask 64512   ;;  %vm1038_vm4 = vcmask 1043456   ;;  %vm938_vm5 = vcmask 130048   ;;  %vm1028_vm6 = vcmask 1045504  }
  0x17   : > { %2229 = vmatpush3.msra.mxu0 %v788_v0  ;;  %v2142_v16 = vld [vmem:[%s2774_s5] ss:$0 sm:$0xff]  ;;  %vm2064_vm7 = vcmask 11264   ;;  %vm2062_vm8 = vcmask 15360  }
  0x18   : > { %s774_s27 = scalar_lea.vmem %s2773_s8, %s2312_s3  ;;  %v791_v17 = vld [vmem:[%s2775_s30 + $0x8] sm:$0xff]  ;;  %v790_v19 = vld [vmem:[%s2775_s30] sm:$0xff] }
  0x19   : > { %v2489_v2 = vld [vmem:[%s774_s27] sm:$0xff]  ;;  %v2491_v3 = vld [vmem:[%s774_s27 + $0x8] sm:$0xff]  ;;  %v2493_v4 = vld [vmem:[%s774_s27 + $0x10] sm:$0x3]  ;;  %2239 = vmatprep.subr.mxu1 %v791_v17  ;;  %s2776_s27 = sld [smem:[#allocation8_spill]] }
  0x1a   : > { %v799_v5 = vrot.slane %v2489_v2, 1  ;;  %v800_v6 = vrot.slane %v2491_v3, 1  ;;  %v802_v7 = vrot.slane %v2493_v4, 1  ;;  %2240 = vmatpush3.msra.mxu1 %v791_v17  ;;  %v1029_v38 = vrot.slane %v2489_v2, 2  ;;  %v2146_v46 = vld [vmem:[%s2777_s0] ss:$0 sm:$0xff] }
  0x1b   : > { %2241 = vmatprep.subr.mxu1 %v790_v19  ;;  %v1030_v39 = vrot.slane %v2491_v3, 2  ;;  %v1032_v41 = vrot.slane %v2493_v4, 2  ;;  %v1122_v48 = vld [vmem:[%s2778_s26 + $0x8] sm:$0xff]  ;;  %v1121_v49 = vld [vmem:[%s2778_s26] sm:$0xff]  ;;  %s2780_s0 = sld [smem:[#allocation3_spill]] }
  0x1c   : > { %v801_v8 = vsel %vm798_vm1, %v799_v5, %v800_v6  ;;  %808 = vrot.lane.b32.xlu1 %v802_v7, %s2758_s4  ;;  %v803_v9 = vsel %vm798_vm1, %v800_v6, %v802_v7  ;;  %2242 = vmatpush3.msra.mxu1 %v790_v19 }
  0x1d   : > { %804 = vrot.lane.b32.xlu0 %v801_v8, %s2758_s4  ;;  %v1031_v43 = vsel %vm1028_vm6, %v1029_v38, %v1030_v39  ;;  %v1033_v45 = vsel %vm1028_vm6, %v1030_v39, %v1032_v41 }
  0x1f   : > { %v793_v22 = vld [vmem:[%s2776_s27] sm:$0xf] }
  0x20   : > { %2246 = vmatprep.subr.msk.mxu1 %vm1038_vm4, %v793_v22 }
  0x21   : > { %806 = vrot.lane.b32.xlu0 %v803_v9, %s2758_s4  ;;  %s779_s6 = scalar_lea.vmem %s2780_s0, %s2312_s3  ;;  %s2781_s3 = smov 8  }
  0x22   : > { %v2563_v61 = vld [vmem:[%s779_s6 + $0x10] sm:$0x3]  ;;  %v2567_v0 = vld [vmem:[%s779_s6 + $0x8] sm:$0xff]  ;;  %s2782_s4 = smov 4  }
  0x23   : > { %v1354_v6 = vrot.slane %v2567_v0, 1 }
  0x8e   : > { %v809_v13 = vpop.permute.xlu1 %808 }
  0x8f   : > { %v805_v10 = vpop.permute.xlu0 %804  ;;  %v816_v15 = vsel %vm813_vm2, %v2493_v4, %v809_v13 }
  0x90   : > { %v814_v11 = vsel %vm813_vm2, %v2489_v2, %v805_v10  ;;  %v2569_v2 = vld [vmem:[%s779_s6] sm:$0xff]  ;;  %s2783_s6 = sld [smem:[#allocation11_spill]] }
  0x91   : > { %2231 = vmatmul.mubr.msk.f32.vlgmr.msra.gmra.mxu0 %vm823_vm3, %v814_v11  ;;  %v1353_v8 = vrot.slane %v2569_v2, 1 }
  0x92   : > { %2233 = vmatprep.mubr.msk.f32.mxu0 %vm2334_vm0, %v2333_v1 }
  0x93   : > { %v807_v12 = vpop.permute.xlu0 %806  ;;  %v1355_v11 = vsel %vm798_vm1, %v1353_v8, %v1354_v6 }
  0x94   : > { %v815_v14 = vsel %vm813_vm2, %v2491_v3, %v807_v12  ;;  %v1356_v3 = vrot.slane %v2563_v61, 1 }
  0x95   : > { %2234 = vmatmul.mubr.msk.f32.gmra.mxu0 %vm823_vm3, %v815_v14 }
  0x96   : > { %2236 = vmatprep.mubr.msk.f32.mxu0 %vm2334_vm0, %v2333_v1  ;;  %v1357_v9 = vsel %vm798_vm1, %v1354_v6, %v1356_v3 }
  0x99   : > { %2237 = vmatmul.mubr.msk.f32.gmra.mxu0 %vm823_vm3, %v816_v15  ;;  %v1343_v15 = vld [vmem:[%s2742_s12] sm:$0xff] }
 0x151   : > { %v899_v18 = vpop.f32.mrf.mxu0 }
 0x152   : > { %v900_v20 = vadd.f32 %v2142_v16, %v899_v18 }
 0x153   : > { %v2232_v21 = vpop.f32.mrf.mxu0 }
 0x154   : > { %v913_v24 = vmax.f32 %v900_v20, 0.0 }
 0x155   : > { %v904_v23 = vpop.f32.mrf.mxu0 }
 0x156   : > { %v905_v25 = vadd.f32 %v2142_v16, %v904_v23  ;;  %v919_v29 = vrot.slane %v913_v24, 1  ;;  %v1125_v23 = vld [vmem:[%s2740_s10 + $0x8] sm:$0xff] }
 0x157   : > { %v2235_v26 = vpop.f32.mrf.mxu0  ;;  %2258 = vmatprep.subr.mxu0 %v1125_v23 }
 0x158   : > { %v914_v27 = vmax.f32 %v905_v25, 0.0  ;;  %2259 = vmatpush3.msra.mxu0 %v1125_v23  ;;  %v2153_v25 = vld [vmem:[%s2783_s6] ss:$0 sm:$0xff]  ;;  %s2183_s6 = sshll.u32 %s2785_s2, 4 }
 0x159   : > { %v909_v28 = vpop.f32.mrf.mxu0  ;;  %s784_s8 = scalar_lea.vmem %s2755_s25, %s2183_s6 }
 0x15a   : > { %v920_v30 = vrot.slane %v914_v27, 1  ;;  %v910_v31 = vadd.f32 %v2142_v16, %v909_v28  ;;  %v2159_v28 = vld [vmem:[%s2743_s13] ss:$0 sm:$0xff] }
 0x15b   : > { %v2238_v32 = vpop.f32.mrf.mxu0 }
 0x15c   : > { %v915_v33 = vmax.f32 %v910_v31, 0.0  ;;  %v921_v34 = vsel %vm798_vm1, %v919_v29, %v920_v30  ;;  %v1346_v31 = vld [vmem:[%s2744_s14 + $0x8] sm:$0xff] }
 0x15d   : > { %924 = vrot.lane.b32.xlu1 %v921_v34, %s2760_s28 }
 0x15e   : > { %v922_v35 = vrot.slane %v915_v33, 1 }
 0x160   : > { %v923_v36 = vsel %vm798_vm1, %v920_v30, %v922_v35 }
 0x161   : > { %926 = vrot.lane.b32.xlu0 %v923_v36, %s2760_s28  ;;  %s2779_s28 = sld [smem:[#allocation9_spill]] }
 0x167   : > { %v2149_v52 = vld [vmem:[%s2779_s28] ss:$0 sm:$0xff] }
 0x1cf   : > { %v925_v37 = vpop.permute.xlu1 %924 }
 0x1d0   : > { %v930_v40 = vsel %vm823_vm3, %v913_v24, %v925_v37  ;;  %v1124_v24 = vld [vmem:[%s2740_s10] sm:$0xff] }
 0x1d1   : > { %2243 = vmatprep.mubr.msk.f32.mxu1 %vm938_vm5, %v930_v40  ;;  %2260 = vmatprep.subr.mxu0 %v1124_v24 }
 0x1d2   : > { %2261 = vmatpush3.msra.mxu0 %v1124_v24 }
 0x1d3   : > { %v927_v42 = vpop.permute.xlu0 %926  ;;  %2276 = vmatprep.subr.mxu0 %v1346_v31 }
 0x1d4   : > { %v931_v44 = vsel %vm823_vm3, %v914_v27, %v927_v42 }
 0x1d5   : > { %2244 = vmatmul.mubr.msk.f32.vlgmr.msra.gmra.mxu1 %vm938_vm5, %v931_v44 }
 0x1d6   : > { %2247 = vmatpush3.msk.msra.mxu1 %vm1038_vm4, %v793_v22  ;;  %2248 = vmatprep.mubr.msk.f32.mxu1 %vm813_vm2, %v1031_v43 }
 0x1d7   : > { %2251 = vmatprep.subr.mxu1 %v1122_v48 }
 0x1d9   : > { %2249 = vmatmul.mubr.msk.f32.vlgmr.msra.gmra.mxu1 %vm813_vm2, %v1033_v45 }
 0x1da   : > { %2252 = vmatpush3.msra.mxu1 %v1122_v48 }
 0x1db   : > { %2253 = vmatprep.subr.mxu1 %v1121_v49 }
 0x1dc   : > { %2254 = vmatpush3.msra.mxu1 %v1121_v49 }
 0x1dd   : > { %2265 = vmatprep.subr.mxu1 %v2333_v1 }
 0x295   : > { %v2245_v47 = vpop.f32.mrf.mxu1 }
 0x296   : > { %v1017_v50 = vadd.f32 %v2245_v47, %v2146_v46 }
 0x297   : > { %v1011_v51 = vpop.f32.mrf.mxu1 }
 0x298   : > { %v1012_v53 = vadd.f32 %v2146_v46, %v1011_v51  ;;  %v1021_v55 = vmax.f32 %v1017_v50, 0.0 }
 0x299   : > { %v2250_v54 = vpop.f32.mrf.mxu1 }
 0x29a   : > { %v1114_v56 = vadd.f32 %v2250_v54, %v2149_v52  ;;  %v1020_v58 = vmax.f32 %v1012_v53, 0.0 }
 0x29b   : > { %v1108_v57 = vpop.f32.mrf.mxu1 }
 0x29c   : > { %v1118_v59 = vadd.f32 %v1114_v56, %v1021_v55  ;;  %v1109_v60 = vadd.f32 %v2149_v52, %v1108_v57  ;;  %v1345_v57 = vld [vmem:[%s2744_s14] sm:$0xff] }
 0x29e   : > { %v2565_v62 = vmax.f32 %v1118_v59, 0.0  ;;  %v1117_v63 = vadd.f32 %v1109_v60, %v1020_v58  ;;  %v1348_v58 = vld [vmem:[%s2746_s16] sm:$0xf]  ;;  %v1579_v60 = vrot.slane %v2569_v2, 2 }
 0x2a0   : > { %v2572_v4 = vmax.f32 %v1117_v63, 0.0  ;;  %v1130_v5 = vrot.slane %v2565_v62, 2  ;;  %v1580_v63 = vrot.slane %v2567_v0, 2 }
 0x2a2   : > { %1134 = vrot.lane.b32.xlu0 %v1130_v5, %s2781_s3  ;;  %v1129_v7 = vrot.slane %v2572_v4, 2 }
 0x2a4   : > { %v1131_v10 = vsel %vm1028_vm6, %v1129_v7, %v1130_v5  ;;  %v1582_v5 = vrot.slane %v2563_v61, 2  ;;  %v1581_v7 = vsel %vm1028_vm6, %v1579_v60, %v1580_v63 }
 0x2a5   : > { %1132 = vrot.lane.b32.xlu1 %v1131_v10, %s2781_s3 }
 0x2a6   : > { %1360 = vrot.lane.b32.xlu0 %v1357_v9, %s2782_s4 }
 0x2a9   : > { %1358 = vrot.lane.b32.xlu1 %v1355_v11, %s2782_s4  ;;  %v1671_v11 = vld [vmem:[%s2748_s18 + $0x8] sm:$0xff] }
 0x2ad   : > { %1362 = vrot.lane.b32.xlu1 %v1356_v3, %s2782_s4 }
 0x314   : > { %v1135_v12 = vpop.permute.xlu0 %1134 }
 0x315   : > { %v1139_v16 = vsel %vm823_vm3, %v2565_v62, %v1135_v12  ;;  %v1670_v12 = vld [vmem:[%s2748_s18] sm:$0xff] }
 0x317   : > { %v1133_v13 = vpop.permute.xlu1 %1132 }
 0x318   : > { %v1138_v14 = vsel %vm823_vm3, %v2572_v4, %v1133_v13  ;;  %v1361_v19 = vpop.permute.xlu0 %1360 }
 0x319   : > { %2255 = vmatprep.mubr.msk.f32.mxu1 %vm938_vm5, %v1138_v14  ;;  %v1368_v20 = vsel %vm813_vm2, %v2567_v0, %v1361_v19  ;;  %v1583_v0 = vsel %vm1028_vm6, %v1580_v63, %v1582_v5  ;;  %v2173_v63 = vld [vmem:[%s2751_s21] ss:$0 sm:$0xff] }
 0x31a   : > { %2256 = vmatmul.mubr.msk.f32.vlgmr.msra.gmra.mxu1 %vm938_vm5, %v1139_v16 }
 0x31b   : > { %2266 = vmatpush3.msra.mxu1 %v1343_v15  ;;  %v1359_v17 = vpop.permute.xlu1 %1358  ;;  %2267 = vmatprep.mubr.msk.f32.mxu1 %vm2334_vm0, %v2333_v1  ;;  %v2166_v15 = vld [vmem:[%s2747_s17] ss:$0 sm:$0xff] }
 0x31c   : > { %v1367_v18 = vsel %vm813_vm2, %v2569_v2, %v1359_v17 }
 0x31e   : > { %2268 = vmatmul.mubr.msk.f32.vlgmr.msra.gmra.mxu1 %vm823_vm3, %v1367_v18 }
 0x31f   : > { %2270 = vmatprep.mubr.msk.f32.mxu1 %vm2334_vm0, %v2333_v1  ;;  %v1363_v21 = vpop.permute.xlu1 %1362 }
 0x320   : > { %v1369_v22 = vsel %vm813_vm2, %v2563_v61, %v1363_v21  ;;  %v2163_v61 = vld [vmem:[%s2745_s15] ss:$0 sm:$0xff] }
 0x322   : > { %2271 = vmatmul.mubr.msk.f32.gmra.mxu1 %vm823_vm3, %v1368_v20 }
 0x323   : > { %2273 = vmatprep.mubr.msk.f32.mxu1 %vm2334_vm0, %v2333_v1 }
 0x326   : > { %2274 = vmatmul.mubr.msk.f32.gmra.mxu1 %vm823_vm3, %v1369_v22 }
 0x3da   : > { %v2257_v26 = vpop.f32.mrf.mxu1 }
 0x3db   : > { %v1224_v1 = vadd.f32 %v2257_v26, %v2153_v25 }
 0x3dc   : > { %v1218_v27 = vpop.f32.mrf.mxu1 }
 0x3dd   : > { %v1228_v29 = vmax.f32 %v1224_v1, 0.0  ;;  %v1219_v30 = vadd.f32 %v2153_v25, %v1218_v27 }
 0x3de   : > { %v1451_v32 = vpop.f32.mrf.mxu1 }
 0x3df   : > { %v1232_v33 = vrot.slane %v1228_v29, 2  ;;  %v1227_v34 = vmax.f32 %v1219_v30, 0.0  ;;  %v1452_v35 = vadd.f32 %v2159_v28, %v1451_v32 }
 0x3e0   : > { %v2269_v36 = vpop.f32.mrf.mxu1 }
 0x3e1   : > { %v1231_v37 = vrot.slane %v1227_v34, 2  ;;  %1236 = vrot.lane.b32.xlu1 %v1232_v33, %s2781_s3  ;;  %v1465_v39 = vmax.f32 %v1452_v35, 0.0  ;;  %v2170_v35 = vld [vmem:[%s2749_s19] ss:$0 sm:$0xff] }
 0x3e2   : > { %v1456_v38 = vpop.f32.mrf.mxu1 }
 0x3e3   : > { %v1457_v40 = vadd.f32 %v2159_v28, %v1456_v38  ;;  %v1233_v41 = vsel %vm1028_vm6, %v1231_v37, %v1232_v33  ;;  %v1471_v45 = vrot.slane %v1465_v39, 1  ;;  %v1674_v33 = vld [vmem:[%s2750_s20 + $0x8] sm:$0xff]  ;;  %v1889_v37 = vld [vmem:[%s2752_s22] sm:$0xff] }
 0x3e4   : > { %1234 = vrot.lane.b32.xlu0 %v1233_v41, %s2781_s3  ;;  %v2272_v42 = vpop.f32.mrf.mxu1  ;;  %2295 = vmatprep.subr.mxu1 %v1674_v33 }
 0x3e5   : > { %v1466_v43 = vmax.f32 %v1457_v40, 0.0  ;;  %2296 = vmatpush3.msra.mxu1 %v1674_v33 }
 0x3e6   : > { %v1461_v44 = vpop.f32.mrf.mxu1 }
 0x3e7   : > { %v1472_v46 = vrot.slane %v1466_v43, 1  ;;  %v1462_v47 = vadd.f32 %v2159_v28, %v1461_v44 }
 0x3e8   : > { %v2275_v48 = vpop.f32.mrf.mxu1 }
 0x3e9   : > { %v1467_v49 = vmax.f32 %v1462_v47, 0.0  ;;  %v1473_v50 = vsel %vm798_vm1, %v1471_v45, %v1472_v46  ;;  %v1331_v48 = vrot.slane %v2572_v4, 4  ;;  %v1890_v4 = vld [vmem:[%s2753_s23] sm:$0xff] }
 0x3ea   : > { %1476 = vrot.lane.b32.xlu0 %v1473_v50, %s2781_s3 }
 0x3eb   : > { %v1474_v51 = vrot.slane %v1467_v49, 1 }
 0x3ed   : > { %v1475_v52 = vsel %vm798_vm1, %v1472_v46, %v1474_v51  ;;  %v2156_v46 = vld [vmem:[%s2741_s11] ss:$0 sm:$0xff]  ;;  %v1332_v51 = vrot.slane %v2565_v62, 4 }
 0x3ee   : > { %1478 = vrot.lane.b32.xlu1 %v1475_v52, %s2781_s3 }
 0x453   : > { %v1237_v53 = vpop.permute.xlu1 %1236 }
 0x454   : > { %v1241_v56 = vsel %vm823_vm3, %v1228_v29, %v1237_v53  ;;  %v1333_v53 = vsel %vm1038_vm4, %v1331_v48, %v1332_v51 }
 0x456   : > { %v1235_v54 = vpop.permute.xlu0 %1234 }
 0x457   : > { %v1240_v55 = vsel %vm823_vm3, %v1227_v34, %v1235_v54  ;;  %v1673_v34 = vld [vmem:[%s2750_s20] sm:$0xff] }
 0x458   : > { %2262 = vmatprep.mubr.msk.f32.mxu0 %vm938_vm5, %v1240_v55  ;;  %2297 = vmatprep.subr.mxu1 %v1673_v34 }
 0x459   : > { %2263 = vmatmul.mubr.msk.f32.vlgmr.msra.gmra.mxu0 %vm938_vm5, %v1241_v56  ;;  %2298 = vmatpush3.msra.mxu1 %v1673_v34 }
 0x45a   : > { %2277 = vmatpush3.msra.mxu0 %v1346_v31  ;;  %2307 = vmatprep.subr.mxu1 %v1889_v37 }
 0x45b   : > { %2278 = vmatprep.subr.mxu0 %v1345_v57 }
 0x45c   : > { %v1477_v59 = vpop.permute.xlu0 %1476  ;;  %2279 = vmatpush3.msra.mxu0 %v1345_v57 }
 0x45d   : > { %v1482_v3 = vsel %vm823_vm3, %v1465_v39, %v1477_v59  ;;  %2283 = vmatprep.subr.msk.mxu0 %vm1038_vm4, %v1348_v58 }
 0x45e   : > { %2280 = vmatprep.mubr.msk.f32.mxu0 %vm938_vm5, %v1482_v3 }
 0x460   : > { %v1479_v6 = vpop.permute.xlu1 %1478 }
 0x461   : > { %v1483_v8 = vsel %vm823_vm3, %v1466_v43, %v1479_v6 }
 0x462   : > { %2281 = vmatmul.mubr.msk.f32.vlgmr.msra.gmra.mxu0 %vm938_vm5, %v1483_v8 }
 0x463   : > { %2284 = vmatpush3.msk.msra.mxu0 %vm1038_vm4, %v1348_v58  ;;  %2285 = vmatprep.mubr.msk.f32.mxu0 %vm813_vm2, %v1581_v7 }
 0x464   : > { %2288 = vmatprep.subr.mxu0 %v1671_v11 }
 0x466   : > { %2286 = vmatmul.mubr.msk.f32.vlgmr.msra.gmra.mxu0 %vm813_vm2, %v1583_v0 }
 0x467   : > { %2289 = vmatpush3.msra.mxu0 %v1671_v11 }
 0x468   : > { %2290 = vmatprep.subr.mxu0 %v1670_v12 }
 0x469   : > { %2291 = vmatpush3.msra.mxu0 %v1670_v12 }
 0x46a   : > { %2302 = vmatprep.subr.mxu0 %v1890_v4 }
 0x519   : > { %v2264_v2 = vpop.f32.mrf.mxu0 }
 0x51a   : > { %v1326_v49 = vadd.f32 %v2264_v2, %v2156_v46 }
 0x51b   : > { %v1320_v9 = vpop.f32.mrf.mxu0 }
 0x51c   : > { %v1321_v47 = vadd.f32 %v2156_v46, %v1320_v9  ;;  %v1330_v52 = vmax.f32 %v1326_v49, 0.0 }
 0x51e   : > { %v1329_v50 = vmax.f32 %v1321_v47, 0.0  ;;  %v1337_v57 = vadd.f32 %v1332_v51, %v1330_v52 }
 0x520   : > { %v1336_v54 = vadd.f32 %v1333_v53, %v1329_v50  ;;  %v1339_v62 = vmax.f32 %v1337_v57, 0.0 }
 0x522   : > { %v2282_v10 = vpop.f32.mrf.mxu0  ;;  %v1338_v59 = vmax.f32 %v1336_v54, 0.0 }
 0x523   : > { %v1568_v13 = vadd.f32 %v2282_v10, %v2163_v61 }
 0x524   : > { %v1562_v14 = vpop.f32.mrf.mxu0 }
 0x525   : > { %v1563_v16 = vadd.f32 %v2163_v61, %v1562_v14  ;;  %v1572_v18 = vmax.f32 %v1568_v13, 0.0 }
 0x526   : > { %v2287_v17 = vpop.f32.mrf.mxu0 }
 0x527   : > { %v1663_v19 = vadd.f32 %v2287_v17, %v2166_v15  ;;  %v1571_v21 = vmax.f32 %v1563_v16, 0.0 }
 0x528   : > { %v1657_v20 = vpop.f32.mrf.mxu0 }
 0x529   : > { %v1667_v22 = vadd.f32 %v1663_v19, %v1572_v18  ;;  %v1658_v23 = vadd.f32 %v2166_v15, %v1657_v20  ;;  %v2180_v15 = vld [vmem:[%s2754_s24] ss:$0 sm:$0xff] }
 0x52b   : > { %v2667_v24 = vmax.f32 %v1667_v22, 0.0  ;;  %v1666_v25 = vadd.f32 %v1658_v23, %v1571_v21 }
 0x52d   : > { %v2669_v26 = vmax.f32 %v1666_v25, 0.0  ;;  %v1679_v1 = vrot.slane %v2667_v24, 2  ;;  %v1881_v2 = vrot.slane %v2667_v24, 4 }
 0x52f   : > { %1683 = vrot.lane.b32.xlu1 %v1679_v1, %s2781_s3  ;;  %v1678_v27 = vrot.slane %v2669_v26, 2  ;;  %v1880_v6 = vrot.slane %v2669_v26, 4 }
 0x531   : > { %v1680_v28 = vsel %vm1028_vm6, %v1678_v27, %v1679_v1  ;;  %v1882_v10 = vsel %vm1038_vm4, %v1880_v6, %v1881_v2 }
 0x532   : > { %1681 = vrot.lane.b32.xlu0 %v1680_v28, %s2781_s3 }
 0x5a1   : > { %v1684_v29 = vpop.permute.xlu1 %1683 }
 0x5a2   : > { %v1688_v32 = vsel %vm823_vm3, %v2667_v24, %v1684_v29 }
 0x5a4   : > { %v1682_v30 = vpop.permute.xlu0 %1681 }
 0x5a5   : > { %v1687_v31 = vsel %vm823_vm3, %v2669_v26, %v1682_v30 }
 0x5a6   : > { %2292 = vmatprep.mubr.msk.f32.mxu0 %vm938_vm5, %v1687_v31 }
 0x5a7   : > { %2293 = vmatmul.mubr.msk.f32.vlgmr.msra.gmra.mxu0 %vm938_vm5, %v1688_v32 }
 0x5a8   : > { %2303 = vmatpush3.msra.mxu0 %v1890_v4 }
 0x667   : > { %v2294_v36 = vpop.f32.mrf.mxu0 }
 0x668   : > { %v1773_v38 = vadd.f32 %v2294_v36, %v2170_v35 }
 0x669   : > { %v1767_v39 = vpop.f32.mrf.mxu0 }
 0x66a   : > { %v1777_v40 = vmax.f32 %v1773_v38, 0.0  ;;  %v1768_v41 = vadd.f32 %v2170_v35, %v1767_v39 }
 0x66c   : > { %v1781_v42 = vrot.slane %v1777_v40, 2  ;;  %v1776_v43 = vmax.f32 %v1768_v41, 0.0 }
 0x66e   : > { %v1780_v44 = vrot.slane %v1776_v43, 2  ;;  %1785 = vrot.lane.b32.xlu1 %v1781_v42, %s2781_s3 }
 0x670   : > { %v1782_v45 = vsel %vm1028_vm6, %v1780_v44, %v1781_v42 }
 0x671   : > { %1783 = vrot.lane.b32.xlu0 %v1782_v45, %s2781_s3 }
 0x6e0   : > { %v1786_v55 = vpop.permute.xlu1 %1785 }
 0x6e1   : > { %v1790_v60 = vsel %vm823_vm3, %v1777_v40, %v1786_v55 }
 0x6e3   : > { %v1784_v56 = vpop.permute.xlu0 %1783 }
 0x6e4   : > { %v1789_v58 = vsel %vm823_vm3, %v1776_v43, %v1784_v56 }
 0x6e5   : > { %2299 = vmatprep.mubr.msk.f32.mxu1 %vm938_vm5, %v1789_v58 }
 0x6e6   : > { %2300 = vmatmul.mubr.msk.f32.vlgmr.msra.gmra.mxu1 %vm938_vm5, %v1790_v60 }
 0x6e7   : > { %2309 = vmatprep.mubr.msk.f32.mxu1 %vm823_vm3, %v1338_v59  ;;  %2308 = vmatpush3.msra.mxu1 %v1889_v37 }
 0x6ea   : > { %2310 = vmatmul.mubr.msk.f32.vlgmr.msra.gmra.mxu1 %vm823_vm3, %v1339_v62 }
 0x7a6   : > { %v2301_v3 = vpop.f32.mrf.mxu1 }
 0x7a7   : > { %v1875_v5 = vadd.f32 %v2301_v3, %v2173_v63 }
 0x7a8   : > { %v1869_v7 = vpop.f32.mrf.mxu1 }
 0x7a9   : > { %v1879_v8 = vmax.f32 %v1875_v5, 0.0  ;;  %v1870_v0 = vadd.f32 %v2173_v63, %v1869_v7 }
 0x7aa   : > { %v2311_v14 = vpop.f32.mrf.mxu1 }
 0x7ab   : > { %v1878_v9 = vmax.f32 %v1870_v0, 0.0  ;;  %v1886_v61 = vadd.f32 %v1881_v2, %v1879_v8 }
 0x7ac   : > { %v2045_v18 = vpop.f32.mrf.mxu1 }
 0x7ad   : > { %v1885_v11 = vadd.f32 %v1882_v10, %v1878_v9  ;;  %v1888_v13 = vmax.f32 %v1886_v61, 0.0 }
 0x7af   : > { %v1887_v12 = vmax.f32 %v1885_v11, 0.0 }
 0x7b1   : > { %2304 = vmatprep.mubr.msk.f32.mxu0 %vm823_vm3, %v1887_v12 }
 0x7b2   : > { %2305 = vmatmul.mubr.msk.f32.vlgmr.msra.gmra.mxu0 %vm823_vm3, %v1888_v13 }
 0x872   : > { %v2306_v16 = vpop.f32.mrf.mxu0 }
 0x873   : > { %v2051_v17 = vadd.f32 %v2311_v14, %v2306_v16 }
 0x874   : > { %v1964_v19 = vpop.f32.mrf.mxu0 }
 0x875   : > { %v2061_v20 = vadd.f32 %v2180_v15, %v2051_v17  ;;  %v2046_v21 = vadd.f32 %v2045_v18, %v1964_v19 }
 0x877   : > { %2065 = vst.msk [vmem:[%s784_s8 + $0x8] sm:$0xf] %vm2064_vm7, %v2061_v20  ;;  %v2060_v22 = vadd.f32 %v2180_v15, %v2046_v21 }
 0x879   : > { %2063 = vst.msk [vmem:[%s784_s8] sm:$0xff] %vm2062_vm8, %v2060_v22 }
 0x87a PF: > { %s35_s29 = sadd.s32 1, %s2331_s29  }
 0x87b   : > { %p32_p4 = scmp.ge.s32.totalorder %s35_s29, 4  }
 0x87d   :  { %34 = sbr.rel (!%p32_p4) target bundleno = 11 (0xb), region = 153 }

</bundles_post_ra>
